<compile_context>
chip_gen: v7x
topology: tpu7x:2x2x1
jax: 0.10.0
libtpu: 0.0.40
codegen_flags: <defaults>
</compile_context>

<pallas_src>
import functools

import numpy as np
import jax
import jax.numpy as jnp
from jax import lax
from jax.experimental import pallas as pl
from jax.experimental.pallas import tpu as pltpu


def _border_masks(H, W, K):
    """(K*K, H*W) f32 masks: 1.0 where tap (dy,dx) reads an in-bounds pixel."""
    p = (K - 1) // 2
    HW = H * W
    rows = np.arange(HW) // W
    cols = np.arange(HW) % W
    masks = np.ones((K * K, HW), np.float32)
    for dy in range(K):
        for dx in range(K):
            oy, ox = dy - p, dx - p
            valid = ((rows + oy >= 0) & (rows + oy < H) &
                     (cols + ox >= 0) & (cols + ox < W))
            masks[dy * K + dx] = valid.astype(np.float32)
    return masks


def _dsc_kernel(x_ref, masks_ref, dw_w_ref, dw_b_ref, pw_w_ref, pw_b_ref,
                out_ref, *, H, W, K):
    """One packed batch group per grid step, channel-major layout.

    x_ref    : (1, P*Cin, H*W)     flattened input (spatial on lanes)
    masks_ref: (K*K, H*W)          precomputed border masks (f32)
    dw_w_ref : (P*Cin, K*K)        depthwise weights (tiled over pack factor)
    dw_b_ref : (P*Cin, 1)          depthwise bias
    pw_w_ref : (P*Cout, P*Cin)     block-diagonal pointwise (1x1 conv) weights
    pw_b_ref : (P*Cout, 1)         pointwise bias
    out_ref  : (1, P*Cout, H*W)    lane-dense output slab
    """
    HW = H * W
    p = (K - 1) // 2

    x = x_ref[0].astype(jnp.float32)                  # (P*Cin, HW)
    dw_w = dw_w_ref[...].astype(jnp.float32)          # (P*Cin, K*K)
    masks = masks_ref[...]                            # (K*K, HW) f32
    pcin = x.shape[0]

    # ---- depthwise conv: K*K taps as lane rotations + multiplicative masks --
    # Accumulator starts as the (hoisted) bias broadcast.
    acc = jnp.broadcast_to(dw_b_ref[...].astype(jnp.float32), (pcin, HW))
    for dy in range(K):
        for dx in range(K):
            oy, ox = dy - p, dx - p
            s = oy * W + ox                           # flat-index shift of tap
            if s == 0:
                shifted = x
            else:
                # shifted[i] = x[i + s]; wrapped lanes zeroed by the mask.
                shifted = pltpu.roll(x, shift=(-s) % HW, axis=1)

            t = dy * K + dx
            if oy != 0 or ox != 0:
                shifted = shifted * masks[t:t + 1, :]  # single VPU mul per tap
            acc = acc + shifted * dw_w[:, t:t + 1]     # per-channel FMA

    # ---- pointwise 1x1 conv: single MXU matmul with block-diagonal weight ---
    pw_w = pw_w_ref[...].astype(jnp.float32)           # (P*Cout, P*Cin)
    out = jnp.dot(pw_w, acc, preferred_element_type=jnp.float32)
    out = out + pw_b_ref[...].astype(jnp.float32)      # (P*Cout, 1) broadcast

    out_ref[0] = out.astype(out_ref.dtype)


def dsc_forward(x_nchw, dw_w, dw_b, pw_w, pw_b, kernel_size):
    """x_nchw: (N, Cin, H, W); dw_w: (Cin, 1, K, K); pw_w: (Cout, Cin, 1, 1)."""
    N, Cin, H, W = x_nchw.shape
    K = kernel_size
    if K % 2 != 1:
        # PyTorch padding=(K-1)//2 is only "same" for odd K; guard semantics.
        raise ValueError("DSC Pallas kernel supports odd kernel_size only.")
    HW = H * W
    Cout = pw_w.shape[0]

    # Batch-pack factor: fill the 8 f32 sublanes of each vreg tile.
    P = max(1, 8 // max(Cin, 1))
    P = min(P, N)
    while P > 1 and N % P != 0:                       # P must divide N
        P -= 1
    G = N // P
    PCin, PCout = P * Cin, P * Cout

    # Wrapper-side ops: free reshapes of contiguous arrays plus a few tiny
    # (<= kilobyte-scale) weight tilings; no pads, no transposes of x.
    x_flat = x_nchw.reshape(G, PCin, HW)
    dw_w_k = jnp.tile(dw_w.reshape(Cin, K * K), (P, 1))      # (P*Cin, K*K)
    dw_b_k = jnp.tile(dw_b.reshape(Cin, 1), (P, 1))          # (P*Cin, 1)
    pw_w_2d = pw_w.reshape(Cout, Cin)
    pw_w_bd = jnp.kron(jnp.eye(P, dtype=pw_w_2d.dtype), pw_w_2d)  # (P*Cout, P*Cin)
    pw_b_k = jnp.tile(pw_b.reshape(Cout, 1), (P, 1))         # (P*Cout, 1)
    masks = jnp.asarray(_border_masks(H, W, K))              # (K*K, HW) ~9 KB

    out_flat = pl.pallas_call(
        functools.partial(_dsc_kernel, H=H, W=W, K=K),
        out_shape=jax.ShapeDtypeStruct((G, PCout, HW), x_nchw.dtype),
        grid=(G,),
        in_specs=[
            pl.BlockSpec((1, PCin, HW), lambda g: (g, 0, 0)),
            pl.BlockSpec((K * K, HW), lambda g: (0, 0)),
            pl.BlockSpec((PCin, K * K), lambda g: (0, 0)),
            pl.BlockSpec((PCin, 1), lambda g: (0, 0)),
            pl.BlockSpec((PCout, PCin), lambda g: (0, 0)),
            pl.BlockSpec((PCout, 1), lambda g: (0, 0)),
        ],
        out_specs=pl.BlockSpec((1, PCout, HW), lambda g: (g, 0, 0)),
        compiler_params=pltpu.CompilerParams(
            dimension_semantics=("parallel",)),   # shards groups across v7x TCs
    )(x_flat, masks, dw_w_k, dw_b_k, pw_w_bd, pw_b_k)

    # (G, P*Cout, HW) -> (N, Cout, H, W): free reshape (group order == batch order).
    return out_flat.reshape(N, Cout, H, W)


def dsc_reference(x, dw_w, dw_b, pw_w, pw_b, K):
    """Plain-JAX reference matching PyTorch nn.Conv2d semantics."""
    p = (K - 1) // 2
    y = lax.conv_general_dilated(
        x, dw_w, window_strides=(1, 1), padding=((p, p), (p, p)),
        dimension_numbers=("NCHW", "OIHW", "NCHW"),
        feature_group_count=x.shape[1])
    y = y + dw_b[None, :, None, None]
    z = lax.conv_general_dilated(
        y, pw_w, window_strides=(1, 1), padding=((0, 0), (0, 0)),
        dimension_numbers=("NCHW", "OIHW", "NCHW"))
    z = z + pw_b[None, :, None, None]
    return z


if __name__ == "__main__":
    # Module config: DSC(in_channels=4, out_channels=8, kernel_size=3)
    N, Cin, H, W = 2, 4, 16, 16
    Cout, K = 8, 3

    key = jax.random.PRNGKey(0)
    kx, k1, k2, k3, k4 = jax.random.split(key, 5)

    x = jax.random.normal(kx, (N, Cin, H, W), dtype=jnp.float32)

    # Deterministic synthetic parameters (shapes per nn.Conv2d in __init__).
    dw_w = jax.random.normal(k1, (Cin, 1, K, K), dtype=jnp.float32) * 0.1
    dw_b = jax.random.normal(k2, (Cin,), dtype=jnp.float32) * 0.1
    pw_w = jax.random.normal(k3, (Cout, Cin, 1, 1), dtype=jnp.float32) * 0.1
    pw_b = jax.random.normal(k4, (Cout,), dtype=jnp.float32) * 0.1

    out = dsc_forward(x, dw_w, dw_b, pw_w, pw_b, K)
    out = jax.block_until_ready(out)

    ref = dsc_reference(x, dw_w, dw_b, pw_w, pw_b, K)
    assert out.shape == (N, Cout, H, W), out.shape
    assert jnp.allclose(out, ref, atol=1e-5, rtol=1e-5), float(
        jnp.max(jnp.abs(out - ref)))

    print("KERNEL_OK")
</pallas_src>

<mosaic_0001>
module attributes {stable_mosaic.version = 11 : i64} {
  func.func @_dsc_kernel(%arg0: i32, %arg1: memref<1x8x256xf32, #tpu.memory_space<vmem>>, %arg2: memref<9x256xf32, #tpu.memory_space<vmem>>, %arg3: memref<8x9xf32, #tpu.memory_space<vmem>>, %arg4: memref<8x1xf32, #tpu.memory_space<vmem>>, %arg5: memref<16x8xf32, #tpu.memory_space<vmem>>, %arg6: memref<16x1xf32, #tpu.memory_space<vmem>>, %arg7: memref<1x16x256xf32, #tpu.memory_space<vmem>>) attributes {dimension_semantics = [#tpu.dimension_semantics<parallel>], iteration_bounds = array<i64: 1>, scalar_prefetch = 0 : i64, scratch_operands = 0 : i64, tpu.core_type = #tpu.core_type<tc>, window_params = [{transform_indices = @transform_0, window_bounds = array<i64: 1, 8, 256>}, {pipeline_mode = #tpu.pipeline_mode<synchronous>, transform_indices = @transform_1, window_bounds = array<i64: 9, 256>}, {pipeline_mode = #tpu.pipeline_mode<synchronous>, transform_indices = @transform_2, window_bounds = array<i64: 8, 9>}, {pipeline_mode = #tpu.pipeline_mode<synchronous>, transform_indices = @transform_3, window_bounds = array<i64: 8, 1>}, {pipeline_mode = #tpu.pipeline_mode<synchronous>, transform_indices = @transform_4, window_bounds = array<i64: 16, 8>}, {pipeline_mode = #tpu.pipeline_mode<synchronous>, transform_indices = @transform_5, window_bounds = array<i64: 16, 1>}, {transform_indices = @transform_6, window_bounds = array<i64: 1, 16, 256>}]} {
    %c0 = arith.constant 0 : index
    %c0_0 = arith.constant 0 : index
    %c0_1 = arith.constant 0 : index
    %0 = vector.load %arg1[%c0, %c0_0, %c0_1] : memref<1x8x256xf32, #tpu.memory_space<vmem>>, vector<1x8x256xf32>
    %1 = vector.shape_cast %0 : vector<1x8x256xf32> to vector<8x256xf32>
    %c0_2 = arith.constant 0 : index
    %c0_3 = arith.constant 0 : index
    %2 = vector.load %arg3[%c0_2, %c0_3] : memref<8x9xf32, #tpu.memory_space<vmem>>, vector<8x9xf32>
    %c0_4 = arith.constant 0 : index
    %c0_5 = arith.constant 0 : index
    %3 = vector.load %arg2[%c0_4, %c0_5] : memref<9x256xf32, #tpu.memory_space<vmem>>, vector<9x256xf32>
    %c0_6 = arith.constant 0 : index
    %c0_7 = arith.constant 0 : index
    %4 = vector.load %arg4[%c0_6, %c0_7] : memref<8x1xf32, #tpu.memory_space<vmem>>, vector<8x1xf32>
    %5 = vector.shape_cast %4 : vector<8x1xf32> to vector<8x1xf32>
    %6 = vector.broadcast %5 : vector<8x1xf32> to vector<8x256xf32>
    %c17_i32 = arith.constant 17 : i32
    %7 = tpu.dynamic_rotate %1 by %c17_i32 dim 1 : vector<8x256xf32>, i32 -> vector<8x256xf32>
    %8 = vector.extract_strided_slice %3 {offsets = [0, 0], sizes = [1, 256], strides = [1, 1]} : vector<9x256xf32> to vector<1x256xf32>
    %9 = vector.broadcast %8 : vector<1x256xf32> to vector<8x256xf32>
    %10 = arith.mulf %7, %9 : vector<8x256xf32>
    %11 = vector.extract_strided_slice %2 {offsets = [0, 0], sizes = [8, 1], strides = [1, 1]} : vector<8x9xf32> to vector<8x1xf32>
    %12 = vector.broadcast %11 : vector<8x1xf32> to vector<8x256xf32>
    %13 = arith.mulf %10, %12 : vector<8x256xf32>
    %14 = arith.addf %6, %13 : vector<8x256xf32>
    %c16_i32 = arith.constant 16 : i32
    %15 = tpu.dynamic_rotate %1 by %c16_i32 dim 1 : vector<8x256xf32>, i32 -> vector<8x256xf32>
    %16 = vector.extract_strided_slice %3 {offsets = [1, 0], sizes = [1, 256], strides = [1, 1]} : vector<9x256xf32> to vector<1x256xf32>
    %17 = vector.broadcast %16 : vector<1x256xf32> to vector<8x256xf32>
    %18 = arith.mulf %15, %17 : vector<8x256xf32>
    %19 = vector.extract_strided_slice %2 {offsets = [0, 1], sizes = [8, 1], strides = [1, 1]} : vector<8x9xf32> to vector<8x1xf32>
    %20 = vector.broadcast %19 : vector<8x1xf32> to vector<8x256xf32>
    %21 = arith.mulf %18, %20 : vector<8x256xf32>
    %22 = arith.addf %14, %21 : vector<8x256xf32>
    %c15_i32 = arith.constant 15 : i32
    %23 = tpu.dynamic_rotate %1 by %c15_i32 dim 1 : vector<8x256xf32>, i32 -> vector<8x256xf32>
    %24 = vector.extract_strided_slice %3 {offsets = [2, 0], sizes = [1, 256], strides = [1, 1]} : vector<9x256xf32> to vector<1x256xf32>
    %25 = vector.broadcast %24 : vector<1x256xf32> to vector<8x256xf32>
    %26 = arith.mulf %23, %25 : vector<8x256xf32>
    %27 = vector.extract_strided_slice %2 {offsets = [0, 2], sizes = [8, 1], strides = [1, 1]} : vector<8x9xf32> to vector<8x1xf32>
    %28 = vector.broadcast %27 : vector<8x1xf32> to vector<8x256xf32>
    %29 = arith.mulf %26, %28 : vector<8x256xf32>
    %30 = arith.addf %22, %29 : vector<8x256xf32>
    %c1_i32 = arith.constant 1 : i32
    %31 = tpu.dynamic_rotate %1 by %c1_i32 dim 1 : vector<8x256xf32>, i32 -> vector<8x256xf32>
    %32 = vector.extract_strided_slice %3 {offsets = [3, 0], sizes = [1, 256], strides = [1, 1]} : vector<9x256xf32> to vector<1x256xf32>
    %33 = vector.broadcast %32 : vector<1x256xf32> to vector<8x256xf32>
    %34 = arith.mulf %31, %33 : vector<8x256xf32>
    %35 = vector.extract_strided_slice %2 {offsets = [0, 3], sizes = [8, 1], strides = [1, 1]} : vector<8x9xf32> to vector<8x1xf32>
    %36 = vector.broadcast %35 : vector<8x1xf32> to vector<8x256xf32>
    %37 = arith.mulf %34, %36 : vector<8x256xf32>
    %38 = arith.addf %30, %37 : vector<8x256xf32>
    %39 = vector.extract_strided_slice %2 {offsets = [0, 4], sizes = [8, 1], strides = [1, 1]} : vector<8x9xf32> to vector<8x1xf32>
    %40 = vector.broadcast %39 : vector<8x1xf32> to vector<8x256xf32>
    %41 = arith.mulf %1, %40 : vector<8x256xf32>
    %42 = arith.addf %38, %41 : vector<8x256xf32>
    %c255_i32 = arith.constant 255 : i32
    %43 = tpu.dynamic_rotate %1 by %c255_i32 dim 1 : vector<8x256xf32>, i32 -> vector<8x256xf32>
    %44 = vector.extract_strided_slice %3 {offsets = [5, 0], sizes = [1, 256], strides = [1, 1]} : vector<9x256xf32> to vector<1x256xf32>
    %45 = vector.broadcast %44 : vector<1x256xf32> to vector<8x256xf32>
    %46 = arith.mulf %43, %45 : vector<8x256xf32>
    %47 = vector.extract_strided_slice %2 {offsets = [0, 5], sizes = [8, 1], strides = [1, 1]} : vector<8x9xf32> to vector<8x1xf32>
    %48 = vector.broadcast %47 : vector<8x1xf32> to vector<8x256xf32>
    %49 = arith.mulf %46, %48 : vector<8x256xf32>
    %50 = arith.addf %42, %49 : vector<8x256xf32>
    %c241_i32 = arith.constant 241 : i32
    %51 = tpu.dynamic_rotate %1 by %c241_i32 dim 1 : vector<8x256xf32>, i32 -> vector<8x256xf32>
    %52 = vector.extract_strided_slice %3 {offsets = [6, 0], sizes = [1, 256], strides = [1, 1]} : vector<9x256xf32> to vector<1x256xf32>
    %53 = vector.broadcast %52 : vector<1x256xf32> to vector<8x256xf32>
    %54 = arith.mulf %51, %53 : vector<8x256xf32>
    %55 = vector.extract_strided_slice %2 {offsets = [0, 6], sizes = [8, 1], strides = [1, 1]} : vector<8x9xf32> to vector<8x1xf32>
    %56 = vector.broadcast %55 : vector<8x1xf32> to vector<8x256xf32>
    %57 = arith.mulf %54, %56 : vector<8x256xf32>
    %58 = arith.addf %50, %57 : vector<8x256xf32>
    %c240_i32 = arith.constant 240 : i32
    %59 = tpu.dynamic_rotate %1 by %c240_i32 dim 1 : vector<8x256xf32>, i32 -> vector<8x256xf32>
    %60 = vector.extract_strided_slice %3 {offsets = [7, 0], sizes = [1, 256], strides = [1, 1]} : vector<9x256xf32> to vector<1x256xf32>
    %61 = vector.broadcast %60 : vector<1x256xf32> to vector<8x256xf32>
    %62 = arith.mulf %59, %61 : vector<8x256xf32>
    %63 = vector.extract_strided_slice %2 {offsets = [0, 7], sizes = [8, 1], strides = [1, 1]} : vector<8x9xf32> to vector<8x1xf32>
    %64 = vector.broadcast %63 : vector<8x1xf32> to vector<8x256xf32>
    %65 = arith.mulf %62, %64 : vector<8x256xf32>
    %66 = arith.addf %58, %65 : vector<8x256xf32>
    %c239_i32 = arith.constant 239 : i32
    %67 = tpu.dynamic_rotate %1 by %c239_i32 dim 1 : vector<8x256xf32>, i32 -> vector<8x256xf32>
    %68 = vector.extract_strided_slice %3 {offsets = [8, 0], sizes = [1, 256], strides = [1, 1]} : vector<9x256xf32> to vector<1x256xf32>
    %69 = vector.broadcast %68 : vector<1x256xf32> to vector<8x256xf32>
    %70 = arith.mulf %67, %69 : vector<8x256xf32>
    %71 = vector.extract_strided_slice %2 {offsets = [0, 8], sizes = [8, 1], strides = [1, 1]} : vector<8x9xf32> to vector<8x1xf32>
    %72 = vector.broadcast %71 : vector<8x1xf32> to vector<8x256xf32>
    %73 = arith.mulf %70, %72 : vector<8x256xf32>
    %74 = arith.addf %66, %73 : vector<8x256xf32>
    %c0_8 = arith.constant 0 : index
    %c0_9 = arith.constant 0 : index
    %75 = vector.load %arg5[%c0_8, %c0_9] : memref<16x8xf32, #tpu.memory_space<vmem>>, vector<16x8xf32>
    %cst = arith.constant dense<0.000000e+00> : vector<16x256xf32>
    %76 = tpu.matmul %75, %74, %cst {dimension_numbers = #tpu.dot_dimension_numbers<[1], [0], [0], [1], [0, 0, 1, 1], [], []>} : vector<16x8xf32>, vector<8x256xf32>, vector<16x256xf32> -> vector<16x256xf32>
    %c0_10 = arith.constant 0 : index
    %c0_11 = arith.constant 0 : index
    %77 = vector.load %arg6[%c0_10, %c0_11] : memref<16x1xf32, #tpu.memory_space<vmem>>, vector<16x1xf32>
    %78 = vector.broadcast %77 : vector<16x1xf32> to vector<16x256xf32>
    %79 = arith.addf %76, %78 : vector<16x256xf32>
    %c0_12 = arith.constant 0 : index
    %c0_13 = arith.constant 0 : index
    %c0_14 = arith.constant 0 : index
    %80 = vector.load %arg7[%c0_12, %c0_13, %c0_14] : memref<1x16x256xf32, #tpu.memory_space<vmem>>, vector<1x16x256xf32>
    %81 = vector.shape_cast %80 : vector<1x16x256xf32> to vector<16x256xf32>
    %82 = vector.shape_cast %79 : vector<16x256xf32> to vector<1x16x256xf32>
    tpu.vector_store %arg7[%c0_12, %c0_13, %c0_14], %82 {strides = array<i32>} : memref<1x16x256xf32, #tpu.memory_space<vmem>>, vector<1x16x256xf32>,
    return
  }
  func.func @transform_0(%arg0: i32) -> (i32, i32, i32) {
    %c0_i32 = arith.constant 0 : i32
    %c0_i32_0 = arith.constant 0 : i32
    %c0_i32_1 = arith.constant 0 : i32
    return %arg0, %c0_i32, %c0_i32_0 : i32, i32, i32
  }
  func.func @transform_1(%arg0: i32) -> (i32, i32) {
    %c0_i32 = arith.constant 0 : i32
    %c0_i32_0 = arith.constant 0 : i32
    %c0_i32_1 = arith.constant 0 : i32
    return %c0_i32, %c0_i32_0 : i32, i32
  }
  func.func @transform_2(%arg0: i32) -> (i32, i32) {
    %c0_i32 = arith.constant 0 : i32
    %c0_i32_0 = arith.constant 0 : i32
    %c0_i32_1 = arith.constant 0 : i32
    return %c0_i32, %c0_i32_0 : i32, i32
  }
  func.func @transform_3(%arg0: i32) -> (i32, i32) {
    %c0_i32 = arith.constant 0 : i32
    %c0_i32_0 = arith.constant 0 : i32
    %c0_i32_1 = arith.constant 0 : i32
    return %c0_i32, %c0_i32_0 : i32, i32
  }
  func.func @transform_4(%arg0: i32) -> (i32, i32) {
    %c0_i32 = arith.constant 0 : i32
    %c0_i32_0 = arith.constant 0 : i32
    %c0_i32_1 = arith.constant 0 : i32
    return %c0_i32, %c0_i32_0 : i32, i32
  }
  func.func @transform_5(%arg0: i32) -> (i32, i32) {
    %c0_i32 = arith.constant 0 : i32
    %c0_i32_0 = arith.constant 0 : i32
    %c0_i32_1 = arith.constant 0 : i32
    return %c0_i32, %c0_i32_0 : i32, i32
  }
  func.func @transform_6(%arg0: i32) -> (i32, i32, i32) {
    %c0_i32 = arith.constant 0 : i32
    %c0_i32_0 = arith.constant 0 : i32
    %c0_i32_1 = arith.constant 0 : i32
    return %arg0, %c0_i32, %c0_i32_0 : i32, i32, i32
  }
}

</mosaic_0001>

<bundles_post_ra>
// kernel: tpu_custom_call.1
= control target key start
LH: loop header
LB: loop body
LE: loop exit
PB: predicated region body
PF: predicated region fallthrough
CT: control target
= control target key end

     0   :  { %11 = vsyncpa [#allocation3], 0  ;;  %s664_s0 = inlined_call_operand.vmem [shape: f32[1,8,256], index: 0, kind: input, shape index: {}]   ;;  %s665_s1 = inlined_call_operand.vmem [shape: f32[9,256], index: 1, kind: input, shape index: {}]   ;;  %s666_s2 = inlined_call_operand.hbm [shape: f32[8,9], index: 2, kind: input, shape index: {}]   ;;  %s667_s3 = inlined_call_operand.vmem [shape: f32[8,1], index: 3, kind: input, shape index: {}]   ;;  %s668_s4 = inlined_call_operand.vmem [shape: f32[16,8], index: 4, kind: input, shape index: {}]   ;;  %s669_s5 = inlined_call_operand.vmem [shape: f32[16,1], index: 5, kind: input, shape index: {}]   ;;  %s670_s6 = inlined_call_operand.hbm [shape: f32[1,16,256], index: 6, kind: output, shape index: {}]  }
   0x1   :  { %12 = vsyncpa [#allocation4], 0  ;;  %s465_s21 = smov [#allocation2]   ;;  %s417_s25 = scalar_lea.hbm %s666_s2, 128 }
   0x2   :  { %s23_s22 = sshll.u32 %s465_s21, 4  ;;  %p418_p0 = scmp.ne.s32.totalorder %s666_s2, %s417_s25  ;;  %s24_s22 = int_to_ptr.vmem [resolvable:$true] %s23_s22 }
   0x3   :  { %p421_p1 = scmp.lt.u32.totalorder %s417_s25, %s666_s2 }
   0x5   :  { %p423_p2 = pnand %p421_p1, %p418_p0 }
   0x7   :  { %426 = shalt.err (!%p423_p2)
}
   0x8   :  { %s427_s30 = scalar_lea.vmem %s24_s22, 128  ;;  %p432_p4 = scmp.lt.s32.totalorder %s24_s22, %s24_s22 }
   0x9   :  { %p428_p3 = scmp.ne.s32.totalorder %s24_s22, %s427_s30  ;;  %p433_p5 = scmp.lt.s32.totalorder %s427_s30, %s427_s30 }
   0xb   :  { %p434_p6 = por %p433_p5, %p432_p4 }
   0xd   :  { %p435_p7 = pnand %p434_p6, %p428_p3 }
   0xf   :  { %438 = shalt.err (!%p435_p7)
}
  0x10   :  { %26 = dma.hbm_to_vmem [thread:$0]  %s666_s2, 128, %s24_s22, [#allocation3]  }
  0x11   :  { %461 = dma.done.wait [#allocation3], 128  }
  0x12   :  { %462 = vsyncadd [#allocation3], 4294967168  ;;  %v466_v0 = vmov 1   ;;  %v467_v1 = vmov 0   ;;  %v38_v2 = vld [vmem:[#allocation2] sm:$0xff]  ;;  %s468_s2 = smov 17   ;;  %v53_v25 = vlaneseq }
  0x13   :  { %407 = vset.pattern.permute.xlu1 %v466_v0  ;;  %406 = vset.pattern.permute.xlu0 %v467_v1  ;;  %v43_v3 = vld [vmem:[%s667_s3] sm:$0xff]  ;;  %v469_v5 = vmov 2   ;;  %v545_v6 = vld [vmem:[%s664_s0 + $0x8] sm:$0xff]  ;;  %v470_v7 = vmov 3   ;;  %s471_s3 = smov 16   ;;  %v472_v8 = vmov 6  }
  0x14   :  { %95 = vperm.xlu1 %407, %v38_v2   ;;  %70 = vperm.xlu0 %406, %v38_v2   ;;  %v539_v4 = vld [vmem:[%s664_s0] sm:$0xff]  ;;  %s473_s15 = smov 15   ;;  %v474_v9 = vmov 4   ;;  %s475_s0 = smov 1   ;;  %v476_v10 = vmov 5   ;;  %v478_v11 = vmov 8  }
  0x15   :  { %s477_s16 = smov 127   ;;  %s479_s17 = smov 113   ;;  %v480_v12 = vmov 7   ;;  %v483_v13 = vmov 0.0   ;;  %v262_v14 = vld [vmem:[%s669_s5] sm:$0xff]  ;;  %v263_v15 = vld [vmem:[%s669_s5 + $0x8] sm:$0xff] }
  0x16   :  { %s481_s18 = smov 111   ;;  %s482_s19 = smov 112   ;;  %345 = vmatprep.mubr.f32.mxu0 %v483_v13  ;;  %351 = vmatprep.mubr.f32.mxu1 %v483_v13  ;;  %v572_v28 = vshrl.u32 %v53_v25, 7  ;;  %v574_v29 = vand.u32 127, %v53_v25  ;;  %v582_v33 = vld [vmem:[%s665_s1] sm:$0xff]  ;;  %v587_v34 = vld [vmem:[%s665_s1 + $0x8] sm:$0xff] }
  0x17   :  { %vm274_vm8 = vcmask 64512   ;;  %s484_s10 = smov [#allocation5]  }
  0x18   :  { %46 = vperm.xlu0 %406, %v43_v3   ;;  %49 = vrot.lane.b32.xlu1 %v539_v4, %s468_s2  ;;  %v60_v31 = vsub.s32 0, %v572_v28  ;;  %vm55_vm0 = vcmp.lt.s32.totalorder %v574_v29, 17  ;;  %v86_v35 = vsub.s32 1, %v572_v28  ;;  %vm81_vm1 = vcmp.lt.s32.totalorder %v574_v29, 16  ;;  %s367_s11 = sshll.u32 %s484_s10, 4  ;;  %s368_s11 = int_to_ptr.vmem [resolvable:$true] %s367_s11 }
  0x19   :  { %408 = vset.pattern.permute.xlu1 %v469_v5  ;;  %v111_v41 = vsub.s32 2, %v572_v28  ;;  %vm106_vm2 = vcmp.lt.s32.totalorder %v574_v29, 15  ;;  %v136_v48 = vsub.s32 3, %v572_v28  ;;  %vm131_vm3 = vcmp.lt.s32.totalorder %v574_v29, 1  ;;  %p444_p9 = scmp.lt.s32.totalorder %s368_s11, %s368_s11 }
  0x1a   :  { %v61_v37 = vrot.slane %v582_v33, %v60_v31  ;;  %v65_v38 = vrot.slane %v587_v34, %v60_v31  ;;  %v87_v42 = vrot.slane %v582_v33, %v86_v35  ;;  %v91_v43 = vrot.slane %v587_v34, %v86_v35 }
  0x1b   :  { %v112_v51 = vrot.slane %v582_v33, %v111_v41  ;;  %v116_v52 = vrot.slane %v587_v34, %v111_v41  ;;  %v137_v58 = vrot.slane %v582_v33, %v136_v48  ;;  %v141_v59 = vrot.slane %v587_v34, %v136_v48 }
  0x1c   :  { %120 = vperm.xlu1 %408, %v38_v2   ;;  %51 = vrot.lane.b32.xlu0 %v545_v6, %s468_s2  ;;  %v169_v3 = vsub.s32 5, %v572_v28  ;;  %vm164_vm4 = vcmp.lt.s32.totalorder %v574_v29, 127  ;;  %v194_v13 = vsub.s32 6, %v572_v28  ;;  %vm189_vm5 = vcmp.lt.s32.totalorder %v574_v29, 113 }
  0x1d   :  { %409 = vset.pattern.permute.xlu0 %v470_v7  ;;  %v219_v31 = vsub.s32 7, %v572_v28  ;;  %vm214_vm6 = vcmp.lt.s32.totalorder %v574_v29, 112  ;;  %vm239_vm7 = vcmp.lt.s32.totalorder %v574_v29, 111  ;;  %v261_v29 = vld [vmem:[%s668_s4 + $0x8] sm:$0xff] }
  0x20   :  { %79 = vrot.lane.b32.xlu1 %v545_v6, %s471_s3  ;;  %77 = vrot.lane.b32.xlu0 %v539_v4, %s471_s3 }
  0x21   :  { %412 = vset.pattern.permute.xlu1 %v472_v8 }
  0x24   :  { %102 = vrot.lane.b32.xlu1 %v539_v4, %s473_s15  ;;  %145 = vperm.xlu0 %409, %v38_v2  }
  0x28   :  { %104 = vrot.lane.b32.xlu1 %v545_v6, %s473_s15  ;;  %410 = vset.pattern.permute.xlu0 %v474_v9 }
  0x29   :  { %153 = vperm.xlu0 %410, %v38_v2  }
  0x2c   :  { %127 = vrot.lane.b32.xlu1 %v539_v4, %s475_s0 }
  0x2d   :  { %411 = vset.pattern.permute.xlu0 %v476_v10 }
  0x2e   :  { %178 = vperm.xlu0 %411, %v38_v2  }
  0x30   :  { %129 = vrot.lane.b32.xlu1 %v545_v6, %s475_s0 }
  0x32   :  { %162 = vrot.lane.b32.xlu0 %v545_v6, %s477_s16 }
  0x33   :  { %414 = vset.pattern.permute.xlu0 %v478_v11 }
  0x34   :  { %203 = vperm.xlu1 %412, %v38_v2  }
  0x36   :  { %185 = vrot.lane.b32.xlu0 %v539_v4, %s479_s17 }
  0x38   :  { %160 = vrot.lane.b32.xlu1 %v539_v4, %s477_s16 }
  0x39   :  { %413 = vset.pattern.permute.xlu1 %v480_v12 }
  0x3a   :  { %253 = vperm.xlu0 %414, %v38_v2  }
  0x3c   :  { %228 = vperm.xlu1 %413, %v38_v2  }
  0x3e   :  { %235 = vrot.lane.b32.xlu0 %v539_v4, %s481_s18 }
  0x3f   :  { %415 = vset.pattern.permute.xlu0 %v467_v1 }
  0x40   :  { %187 = vrot.lane.b32.xlu1 %v545_v6, %s479_s17 }
  0x41   :  { %416 = vset.pattern.permute.xlu1 %v467_v1 }
  0x42   :  { %266 = vperm.xlu0 %415, %v262_v14  }
  0x44   :  { %210 = vrot.lane.b32.xlu1 %v539_v4, %s482_s19 }
  0x48   :  { %212 = vrot.lane.b32.xlu1 %v545_v6, %s482_s19 }
  0x4c   :  { %237 = vrot.lane.b32.xlu1 %v545_v6, %s481_s18 }
  0x50   :  { %271 = vperm.xlu1 %416, %v263_v15  }
  0x93   :  { %v96_v16 = vpop.permute.xlu1 %95  ;;  %v71_v17 = vpop.permute.xlu0 %70 }
  0x97   :  { %v47_v18 = vpop.permute.xlu0 %46  ;;  %v50_v19 = vpop.permute.xlu1 %49 }
  0x9b   :  { %v121_v20 = vpop.permute.xlu1 %120  ;;  %v52_v21 = vpop.permute.xlu0 %51 }
  0x9c   :  { %v56_v39 = vsel %vm55_vm0, %v50_v19, %v52_v21  ;;  %v57_v40 = vsel %vm55_vm0, %v52_v21, %v50_v19 }
  0x9d   :  { %v66_v49 = vmul.f32 %v61_v37, %v57_v40  ;;  %v67_v50 = vmul.f32 %v65_v38, %v56_v39 }
  0x9f   :  { %v80_v22 = vpop.permute.xlu1 %79  ;;  %v78_v23 = vpop.permute.xlu0 %77  ;;  %v73_v60 = vmul.f32 %v71_v17, %v66_v49  ;;  %v74_v61 = vmul.f32 %v71_v17, %v67_v50  ;;  %v170_v17 = vrot.slane %v582_v33, %v169_v3  ;;  %v220_v49 = vrot.slane %v582_v33, %v219_v31 }
  0xa0   :  { %v82_v46 = vsel %vm81_vm1, %v78_v23, %v80_v22  ;;  %v83_v47 = vsel %vm81_vm1, %v80_v22, %v78_v23  ;;  %v174_v23 = vrot.slane %v587_v34, %v169_v3  ;;  %v224_v50 = vrot.slane %v587_v34, %v219_v31 }
  0xa1   :  { %v92_v53 = vmul.f32 %v87_v42, %v83_v47  ;;  %v93_v54 = vmul.f32 %v91_v43, %v82_v46  ;;  %v75_v11 = vadd.f32 %v73_v60, %v47_v18  ;;  %v76_v12 = vadd.f32 %v74_v61, %v47_v18 }
  0xa3   :  { %v103_v24 = vpop.permute.xlu1 %102  ;;  %v570_v26 = vpop.permute.xlu0 %145  ;;  %v98_v5 = vmul.f32 %v96_v16, %v92_v53  ;;  %v99_v7 = vmul.f32 %v96_v16, %v93_v54 }
  0xa5   :  { %v100_v19 = vadd.f32 %v98_v5, %v75_v11  ;;  %v101_v21 = vadd.f32 %v99_v7, %v76_v12 }
  0xa7   :  { %v105_v27 = vpop.permute.xlu1 %104 }
  0xa8   :  { %v577_v32 = vpop.permute.xlu0 %153  ;;  %v107_v55 = vsel %vm106_vm2, %v103_v24, %v105_v27  ;;  %v108_v56 = vsel %vm106_vm2, %v105_v27, %v103_v24 }
  0xa9   :  { %v117_v1 = vmul.f32 %v112_v51, %v108_v56  ;;  %v118_v2 = vmul.f32 %v116_v52, %v107_v55  ;;  %v157_v43 = vmul.f32 %v577_v32, %v545_v6 }
  0xab   :  { %v128_v30 = vpop.permute.xlu1 %127  ;;  %v123_v14 = vmul.f32 %v121_v20, %v117_v1  ;;  %v124_v15 = vmul.f32 %v121_v20, %v118_v2  ;;  %v199_v20 = vrot.slane %v587_v34, %v194_v13 }
  0xad   :  { %v597_v44 = vpop.permute.xlu0 %178  ;;  %v125_v35 = vadd.f32 %v123_v14, %v100_v19 }
  0xaf   :  { %v130_v36 = vpop.permute.xlu1 %129 }
  0xb0   :  { %v132_v62 = vsel %vm131_vm3, %v128_v30, %v130_v36  ;;  %v133_v63 = vsel %vm131_vm3, %v130_v36, %v128_v30  ;;  %v195_v30 = vrot.slane %v582_v33, %v194_v13  ;;  %v126_v36 = vadd.f32 %v124_v15, %v101_v21 }
  0xb1   :  { %v163_v0 = vpop.permute.xlu0 %162  ;;  %v142_v9 = vmul.f32 %v137_v58, %v133_v63  ;;  %v143_v10 = vmul.f32 %v141_v59, %v132_v62  ;;  %v380_v58 = vld [vmem:[%s665_s1 + $0x18] ss:$0 sm:$0xff] }
  0xb3   :  { %v599_v45 = vpop.permute.xlu1 %203  ;;  %v148_v24 = vmul.f32 %v570_v26, %v142_v9  ;;  %v149_v18 = vmul.f32 %v570_v26, %v143_v10  ;;  %v156_v26 = vmul.f32 %v577_v32, %v539_v4 }
  0xb5   :  { %v186_v22 = vpop.permute.xlu0 %185  ;;  %v150_v46 = vadd.f32 %v148_v24, %v125_v35  ;;  %v151_v47 = vadd.f32 %v149_v18, %v126_v36 }
  0xb7   :  { %v161_v57 = vpop.permute.xlu1 %160  ;;  %v158_v54 = vadd.f32 %v156_v26, %v150_v46  ;;  %v159_v4 = vadd.f32 %v157_v43, %v151_v47 }
  0xb8   :  { %v165_v25 = vsel %vm164_vm4, %v161_v57, %v163_v0  ;;  %v166_v27 = vsel %vm164_vm4, %v163_v0, %v161_v57 }
  0xb9   :  { %v175_v39 = vmul.f32 %v170_v17, %v165_v25  ;;  %v176_v40 = vmul.f32 %v174_v23, %v166_v27  ;;  %v254_v42 = vpop.permute.xlu0 %253 }
  0xbb   :  { %v229_v8 = vpop.permute.xlu1 %228  ;;  %v181_v51 = vmul.f32 %v597_v44, %v175_v39  ;;  %v182_v52 = vmul.f32 %v597_v44, %v176_v40  ;;  %v379_v44 = vld [vmem:[%s665_s1 + $0x10] ss:$0 sm:$0xff] }
  0xbd   :  { %v236_v57 = vpop.permute.xlu0 %235  ;;  %v183_v59 = vadd.f32 %v181_v51, %v158_v54  ;;  %v184_v60 = vadd.f32 %v182_v52, %v159_v4 }
  0xbf   :  { %v188_v16 = vpop.permute.xlu1 %187 }
  0xc0   :  { %v190_v37 = vsel %vm189_vm5, %v186_v22, %v188_v16  ;;  %v191_v38 = vsel %vm189_vm5, %v188_v16, %v186_v22 }
  0xc1   :  { %v200_v48 = vmul.f32 %v195_v30, %v190_v37  ;;  %v201_v28 = vmul.f32 %v199_v20, %v191_v38  ;;  %v267_v14 = vpop.permute.xlu0 %266 }
  0xc3   :  { %v211_v41 = vpop.permute.xlu1 %210  ;;  %v206_v55 = vmul.f32 %v599_v45, %v200_v48  ;;  %v207_v33 = vmul.f32 %v599_v45, %v201_v28 }
  0xc5   :  { %v209_v3 = vadd.f32 %v207_v33, %v184_v60  ;;  %v208_v5 = vadd.f32 %v206_v55, %v183_v59 }
  0xc7   :  { %v213_v53 = vpop.permute.xlu1 %212 }
  0xc8   :  { %v215_v6 = vsel %vm214_vm6, %v211_v41, %v213_v53  ;;  %v216_v32 = vsel %vm214_vm6, %v213_v53, %v211_v41 }
  0xc9   :  { %v225_v34 = vmul.f32 %v220_v49, %v215_v6  ;;  %v226_v56 = vmul.f32 %v224_v50, %v216_v32 }
  0xcb   :  { %v231_v61 = vmul.f32 %v229_v8, %v225_v34  ;;  %v232_v62 = vmul.f32 %v229_v8, %v226_v56  ;;  %v238_v63 = vpop.permute.xlu1 %237  ;;  %v260_v8 = vld [vmem:[%s668_s4] sm:$0xff]  ;;  %s439_s4 = scalar_lea.vmem %s368_s11, 512 }
  0xcc   :  { %v240_v0 = vsel %vm239_vm7, %v236_v57, %v238_v63  ;;  %v241_v45 = vsel %vm239_vm7, %v238_v63, %v236_v57  ;;  %p440_p8 = scmp.ne.s32.totalorder %s368_s11, %s439_s4  ;;  %p445_p10 = scmp.lt.s32.totalorder %s439_s4, %s439_s4 }
  0xcd   :  { %v250_v1 = vmul.f32 %v379_v44, %v240_v0  ;;  %v251_v2 = vmul.f32 %v380_v58, %v241_v45  ;;  %v234_v7 = vadd.f32 %v232_v62, %v209_v3  ;;  %v233_v10 = vadd.f32 %v231_v61, %v208_v5 }
  0xce   :  { %p446_p11 = por %p445_p10, %p444_p9 }
  0xcf   :  { %v257_v9 = vmul.f32 %v254_v42, %v251_v2  ;;  %v256_v11 = vmul.f32 %v254_v42, %v250_v1  ;;  %v272_v15 = vpop.permute.xlu1 %271 }
  0xd0   :  { %p447_p12 = pnand %p446_p11, %p440_p8 }
  0xd1   :  { %v259_v12 = vadd.f32 %v257_v9, %v234_v7  ;;  %v258_v13 = vadd.f32 %v256_v11, %v233_v10 }
  0xd3   :  { %281 = vmatprep.subr.mxu0 %v259_v12  ;;  %383 = vmatprep.subr.mxu1 %v259_v12 }
  0xd4   :  { %282 = vmatpush1.msra.mxu0 %v258_v13  ;;  %384 = vmatpush1.msra.mxu1 %v258_v13 }
  0xd5   :  { %381 = vmatmul.mubr.msk.f32.vlgmr.msra.gmra.mrb[0].mxu0 %vm274_vm8, %v260_v8  ;;  %382 = vmatmul.mubr.msk.f32.vlgmr.msra.gmra.mrb[0].mxu1 %vm274_vm8, %v261_v29 }
 0x1a8   :  { %v347_v17 = vpop.f32.mrb[0].mxu0  ;;  %v353_v19 = vpop.f32.mrb[0].mxu1 }
 0x1a9   :  { %v348_v21 = vadd.f32 %v347_v17, %v267_v14  ;;  %v354_v22 = vadd.f32 %v353_v19, %v272_v15  ;;  %v349_v23 = vpop.f32.mrb[1].mxu0  ;;  %v355_v16 = vpop.f32.mrb[1].mxu1 }
 0x1aa   :  { %v350_v24 = vadd.f32 %v349_v23, %v267_v14  ;;  %v356_v18 = vadd.f32 %v355_v16, %v272_v15 }
 0x1ab   :  { %358 = vst [vmem:[#allocation5] sm:$0xff] %v348_v21  ;;  %360 = vst [vmem:[#allocation5 + $0x10] sm:$0xff] %v354_v22 }
 0x1ac   :  { %359 = vst [vmem:[#allocation5 + $0x8] sm:$0xff] %v350_v24  ;;  %361 = vst [vmem:[#allocation5 + $0x18] sm:$0xff] %v356_v18 }
 0x1ad   :  { %450 = shalt.err (!%p447_p12)
}
 0x1ae   :  { %s451_s13 = scalar_lea.hbm %s670_s6, 512 }
 0x1af   :  { %p452_p13 = scmp.ne.s32.totalorder %s670_s6, %s451_s13  ;;  %p455_p0 = scmp.lt.u32.totalorder %s451_s13, %s670_s6 }
 0x1b1   :  { %p457_p1 = pnand %p455_p0, %p452_p13 }
 0x1b3   :  { %460 = shalt.err (!%p457_p1)
}
 0x1b4   :  { %s485_s17 = smov 256  }
 0x1b5   :  { %373 = dma.vmem_to_hbm [thread:$0]  %s368_s11, 512, %s670_s6, [#allocation4], %s485_s17, %s485_s17, %s471_s3  }
 0x1b6   :  { %463 = dma.done.wait [#allocation4], 512  }
 0x1b7   :  { %464 = vsyncadd [#allocation4], 4294966784 }
 0x1b8   :  { %377 = vsyncpa [#allocation3], 1 }
 0x1b9   :  { %378 = vsyncpa [#allocation4], 1 }

</bundles_post_ra>
